<compile_context>
chip_gen: v5e
topology: v5e:2x2
jax: 0.10.0
libtpu: 0.0.40
codegen_flags: <defaults>
</compile_context>

<pallas_src>
import functools

import jax
import jax.numpy as jnp
from jax.experimental import pallas as pl
from jax.experimental.pallas import tpu as pltpu

ALPHA = 0.5    # constant per-element weight; folded into the wrapper scale.
               # (For a general alpha, compute (1-alpha) + (2*alpha-1)*y in-kernel.)
GAMMA = 2.0    # exponent == 2 -> square in-kernel
SCALE = 100.0

LANES = 128          # vreg lane width (last-dim tile)
SUBLANES = 8         # f32 sublanes per vreg (accumulator rows)
MAX_TILE_ROWS = 2048 # 2048*128*4B = 1 MiB per input block


def _cdiv(a, b):
    return -(-a // b)


def _round_up(a, m):
    return _cdiv(a, m) * m


def _num_tensorcores():
    """2 on TPU v7x (two TensorCores per device), else 1 (v5e/v6e/...)."""
    try:
        kind = jax.devices()[0].device_kind.lower()
    except Exception:
        return 1
    return 2 if "7" in kind else 1


def _focal_elem(x, y):
    """Per-element focal term WITHOUT the constant alpha=0.5 weight.

    Returns (1 - exp(-bce))**2 * bce for hard binary labels y in {0,1},
    using two transcendentals (exp, log1p) plus one reciprocal:
        e         = exp(-|x|)
        bce       = max(x,0) - x*y + log1p(e)
        exp(-bce) = select(sign(x) agrees with y, 1, e) / (1 + e)
    """
    e = jnp.exp(-jnp.abs(x))
    bce = jnp.maximum(x, 0.0) - x * y + jnp.log1p(e)
    match = jnp.logical_xor(x < 0.0, y > 0.5)     # logit sign agrees with label
    s = jnp.where(match, e, 1.0) / (1.0 + e)      # == 1 - exp(-bce)
    return (s * s) * bce                          # gamma == 2 -> square


def _focal_kernel(pred_ref, label_ref, out_ref, *,
                  rows, num_blocks, blocks_per_core, tile_rows,
                  has_tail, has_phantom):
    c = pl.program_id(0)          # core-split axis (extent 1 or 2)
    i = pl.program_id(1)          # row-block reduction axis

    # Output block is resident across the reduction axis -> use it directly
    # as the accumulator (no VMEM scratch, no epilogue copy).
    @pl.when(i == 0)
    def _():
        out_ref[...] = jnp.zeros_like(out_ref)

    b = c * blocks_per_core + i   # logical row-block id
    row_start = b * tile_rows

    def compute():
        x = pred_ref[...].astype(jnp.float32)
        y = label_ref[...].astype(jnp.float32)
        return _focal_elem(x, y)

    def accum(vals):
        # tile_rows is a multiple of 8 -> pure VPU vreg-add reduce into (8,128).
        out_ref[...] += vals.reshape(
            tile_rows // SUBLANES, SUBLANES, LANES).sum(axis=0)

    in_range = (b < num_blocks) if has_phantom else None

    if not has_tail:
        if in_range is None:
            accum(compute())
        else:
            # Phantom blocks skip the whole elementwise body, not just the add.
            pl.when(in_range)(lambda: accum(compute()))
    else:
        is_full = row_start + tile_rows <= rows
        if in_range is None:
            full_c = is_full
            tail_c = jnp.logical_not(is_full)
        else:
            full_c = jnp.logical_and(in_range, is_full)
            tail_c = jnp.logical_and(in_range, jnp.logical_not(is_full))

        # Interior (full) tiles: no masking.
        @pl.when(full_c)
        def _():
            accum(compute())

        # Only the ragged last block pays for the row mask (zeros out the
        # garbage rows of the Pallas edge-block DMA).
        @pl.when(tail_c)
        def _():
            ridx = jax.lax.broadcasted_iota(jnp.int32, (tile_rows, LANES), 0)
            accum(jnp.where(row_start + ridx < rows, compute(), 0.0))


def focal_loss(pred, label):
    """Pallas focal loss (alpha=0.5, gamma=2, scale=100). Any shape / rank.

    Assumes hard binary labels (values in {0, 1}), matching the training use
    of the original module.
    """
    assert pred.shape == label.shape
    total = int(pred.size)
    assert total > 0

    pred_flat = pred.reshape(-1)
    label_flat = label.reshape(-1)

    rows = total // LANES
    rem = total - rows * LANES

    unweighted_sum = jnp.float32(0.0)

    if rem:
        # <128-element ragged tail handled in plain JAX -- avoids a full-array
        # jnp.pad (HBM read+write of both inputs) before the kernel runs.
        xt = pred_flat[rows * LANES:].astype(jnp.float32)
        yt = label_flat[rows * LANES:].astype(jnp.float32)
        et = jnp.exp(-jnp.abs(xt))
        bce_t = jnp.maximum(xt, 0.0) - xt * yt + jnp.log1p(et)
        st = 1.0 - jnp.exp(-bce_t)
        unweighted_sum = unweighted_sum + jnp.sum((st * st) * bce_t)

    if rows:
        # Lane-dense slab; keep the input dtype (e.g. bf16) so HBM traffic is
        # minimal -- the cast to f32 happens inside the kernel.
        p_src = pred_flat[:rows * LANES] if rem else pred_flat
        l_src = label_flat[:rows * LANES] if rem else label_flat
        pred2d = p_src.reshape(rows, LANES)
        label2d = l_src.reshape(rows, LANES)

        tile_rows = min(MAX_TILE_ROWS, _round_up(rows, SUBLANES))
        num_blocks = _cdiv(rows, tile_rows)
        num_cores = min(_num_tensorcores(), num_blocks)
        blocks_per_core = _cdiv(num_blocks, num_cores)
        has_phantom = num_cores * blocks_per_core != num_blocks
        has_tail = (rows % tile_rows) != 0

        if has_phantom:
            # Clamp so phantom blocks (odd block count on the 2-core split)
            # re-read the last real block; the kernel skips all their work.
            def in_map(c, i):
                return (jnp.minimum(c * blocks_per_core + i, num_blocks - 1), 0)
        else:
            def in_map(c, i):
                return (c * blocks_per_core + i, 0)

        core_sem = pltpu.CORE_PARALLEL if num_cores > 1 else pltpu.ARBITRARY

        kernel = functools.partial(
            _focal_kernel, rows=rows, num_blocks=num_blocks,
            blocks_per_core=blocks_per_core, tile_rows=tile_rows,
            has_tail=has_tail, has_phantom=has_phantom)

        partials = pl.pallas_call(
            kernel,
            out_shape=jax.ShapeDtypeStruct((num_cores * SUBLANES, LANES),
                                           jnp.float32),
            grid_spec=pltpu.PrefetchScalarGridSpec(
                num_scalar_prefetch=0,
                grid=(num_cores, blocks_per_core),
                in_specs=[
                    pl.BlockSpec((tile_rows, LANES), in_map),
                    pl.BlockSpec((tile_rows, LANES), in_map),
                ],
                out_specs=pl.BlockSpec((SUBLANES, LANES), lambda c, i: (c, 0)),
            ),
            compiler_params=pltpu.CompilerParams(
                dimension_semantics=(core_sem, pltpu.ARBITRARY)),
        )(pred2d, label2d)

        # Tiny cross-lane reduce of the (num_cores*8, 128) partials in XLA.
        unweighted_sum = unweighted_sum + jnp.sum(partials)

    # alpha == 0.5 for every element -> folded here; mean over unpadded total.
    return (SCALE * ALPHA / total) * unweighted_sum


def focal_loss_ref(pred, label):
    """Pure-JAX reference (mirrors the PyTorch module exactly)."""
    x = pred.astype(jnp.float32)
    y = label.astype(jnp.float32)
    bce = jnp.maximum(x, 0.0) - x * y + jnp.log1p(jnp.exp(-jnp.abs(x)))
    a = ALPHA * y + (1.0 - ALPHA) * (1.0 - y)
    return SCALE * jnp.mean(a * (1.0 - jnp.exp(-bce)) ** GAMMA * bce)


if __name__ == "__main__":
    key = jax.random.PRNGKey(0)
    kp, kl = jax.random.split(key)
    # NCHW logits / hard binary targets, small shapes.
    pred = jax.random.normal(kp, (2, 4, 16, 16), dtype=jnp.float32)
    label = (jax.random.uniform(kl, (2, 4, 16, 16)) > 0.5).astype(jnp.float32)

    out = jax.block_until_ready(focal_loss(pred, label))
    ref = jax.block_until_ready(focal_loss_ref(pred, label))
    assert jnp.allclose(out, ref, rtol=1e-4, atol=1e-5), (out, ref)
    print("KERNEL_OK")
</pallas_src>

<mosaic_0001>
module attributes {stable_mosaic.version = 11 : i64} {
  func.func @_focal_kernel(%arg0: i32, %arg1: i32, %arg2: memref<16x128xf32, #tpu.memory_space<vmem>>, %arg3: memref<16x128xf32, #tpu.memory_space<vmem>>, %arg4: memref<8x128xf32, #tpu.memory_space<vmem>>) attributes {dimension_semantics = [#tpu.dimension_semantics<arbitrary>, #tpu.dimension_semantics<arbitrary>], iteration_bounds = array<i64: 1, 1>, scalar_prefetch = 0 : i64, scratch_operands = 0 : i64, tpu.core_type = #tpu.core_type<tc>, window_params = [{transform_indices = @transform_0, window_bounds = array<i64: 16, 128>}, {transform_indices = @transform_1, window_bounds = array<i64: 16, 128>}, {transform_indices = @transform_2, window_bounds = array<i64: 8, 128>}]} {
    %c0_i32 = arith.constant 0 : i32
    %0 = arith.cmpi eq, %arg1, %c0_i32 : i32
    %1 = arith.extui %0 : i1 to i32
    %c0_i32_0 = arith.constant 0 : i32
    %2 = arith.cmpi ne, %1, %c0_i32_0 : i32
    scf.if %2 {
      %cst_14 = arith.constant 0.000000e+00 : f32
      %32 = vector.broadcast %cst_14 : f32 to vector<8x128xf32>
      %c0_15 = arith.constant 0 : index
      %c0_16 = arith.constant 0 : index
      %33 = vector.load %arg4[%c0_15, %c0_16] : memref<8x128xf32, #tpu.memory_space<vmem>>, vector<8x128xf32>
      tpu.vector_store %arg4[%c0_15, %c0_16], %32 {strides = array<i32>} : memref<8x128xf32, #tpu.memory_space<vmem>>, vector<8x128xf32>,
    } else {
    }
    %c0 = arith.constant 0 : index
    %c0_1 = arith.constant 0 : index
    %3 = vector.load %arg2[%c0, %c0_1] : memref<16x128xf32, #tpu.memory_space<vmem>>, vector<16x128xf32>
    %c0_2 = arith.constant 0 : index
    %c0_3 = arith.constant 0 : index
    %4 = vector.load %arg3[%c0_2, %c0_3] : memref<16x128xf32, #tpu.memory_space<vmem>>, vector<16x128xf32>
    %5 = math.absf %3 : vector<16x128xf32>
    %cst = arith.constant 0.000000e+00 : f32
    %6 = vector.broadcast %cst : f32 to vector<16x128xf32>
    %7 = arith.subf %6, %5 : vector<16x128xf32>
    %8 = math.exp %7 : vector<16x128xf32>
    %cst_4 = arith.constant 0.000000e+00 : f32
    %9 = vector.broadcast %cst_4 : f32 to vector<16x128xf32>
    %10 = arith.maximumf %3, %9 : vector<16x128xf32>
    %11 = arith.mulf %3, %4 : vector<16x128xf32>
    %12 = arith.subf %10, %11 : vector<16x128xf32>
    %13 = math.log1p %8 : vector<16x128xf32>
    %14 = arith.addf %12, %13 : vector<16x128xf32>
    %cst_5 = arith.constant 0.000000e+00 : f32
    %15 = vector.broadcast %cst_5 : f32 to vector<16x128xf32>
    %16 = arith.cmpf olt, %3, %15 : vector<16x128xf32>
    %cst_6 = arith.constant 5.000000e-01 : f32
    %17 = vector.broadcast %cst_6 : f32 to vector<16x128xf32>
    %18 = arith.cmpf ogt, %4, %17 : vector<16x128xf32>
    %19 = arith.xori %16, %18 : vector<16x128xi1>
    %cst_7 = arith.constant 1.000000e+00 : f32
    %20 = vector.broadcast %cst_7 : f32 to vector<16x128xf32>
    %21 = arith.select %19, %8, %20 : vector<16x128xi1>, vector<16x128xf32>
    %cst_8 = arith.constant 1.000000e+00 : f32
    %22 = vector.broadcast %cst_8 : f32 to vector<16x128xf32>
    %23 = arith.addf %22, %8 : vector<16x128xf32>
    %24 = arith.divf %21, %23 : vector<16x128xf32>
    %25 = arith.mulf %24, %24 : vector<16x128xf32>
    %26 = arith.mulf %25, %14 : vector<16x128xf32>
    %c0_9 = arith.constant 0 : index
    %c0_10 = arith.constant 0 : index
    %27 = vector.load %arg4[%c0_9, %c0_10] : memref<8x128xf32, #tpu.memory_space<vmem>>, vector<8x128xf32>
    %28 = vector.shape_cast %26 : vector<16x128xf32> to vector<2x8x128xf32>
    %cst_11 = arith.constant dense<0.000000e+00> : vector<8x128xf32>
    %29 = vector.multi_reduction <add>, %28, %cst_11 [0] : vector<2x8x128xf32> to vector<8x128xf32>
    %30 = arith.addf %27, %29 : vector<8x128xf32>
    %c0_12 = arith.constant 0 : index
    %c0_13 = arith.constant 0 : index
    %31 = vector.load %arg4[%c0_12, %c0_13] : memref<8x128xf32, #tpu.memory_space<vmem>>, vector<8x128xf32>
    tpu.vector_store %arg4[%c0_12, %c0_13], %30 {strides = array<i32>} : memref<8x128xf32, #tpu.memory_space<vmem>>, vector<8x128xf32>,
    return
  }
  func.func @transform_0(%arg0: i32, %arg1: i32) -> (i32, i32) {
    %c1_i32 = arith.constant 1 : i32
    %0 = arith.muli %arg0, %c1_i32 : i32
    %1 = arith.addi %0, %arg1 : i32
    %c0_i32 = arith.constant 0 : i32
    %c0_i32_0 = arith.constant 0 : i32
    return %1, %c0_i32 : i32, i32
  }
  func.func @transform_1(%arg0: i32, %arg1: i32) -> (i32, i32) {
    %c1_i32 = arith.constant 1 : i32
    %0 = arith.muli %arg0, %c1_i32 : i32
    %1 = arith.addi %0, %arg1 : i32
    %c0_i32 = arith.constant 0 : i32
    %c0_i32_0 = arith.constant 0 : i32
    return %1, %c0_i32 : i32, i32
  }
  func.func @transform_2(%arg0: i32, %arg1: i32) -> (i32, i32) {
    %c0_i32 = arith.constant 0 : i32
    %c0_i32_0 = arith.constant 0 : i32
    return %arg0, %c0_i32 : i32, i32
  }
}

</mosaic_0001>

<bundles_post_ra>
// kernel: tpu_custom_call.1
= control target key start
LH: loop header
LB: loop body
LE: loop exit
PB: predicated region body
PF: predicated region fallthrough
CT: control target
= control target key end

     0   :  { %7 = vsyncpa [#allocation3], 0  ;;  %s349_s0 = inlined_call_operand.hbm [shape: f32[16,128], index: 0, kind: input, shape index: {}]   ;;  %s350_s1 = inlined_call_operand.hbm [shape: f32[16,128], index: 1, kind: input, shape index: {}]   ;;  %s351_s2 = inlined_call_operand.hbm [shape: f32[8,128], index: 2, kind: output, shape index: {}]  }
   0x1   :  { %8 = vsyncpa [#allocation6], 0 }
   0x2   :  { %9 = vsyncpa [#allocation4], 0  ;;  %s18_s11 = sshll.u32 %s349_s0, 4  ;;  %s261_s12 = smov [#allocation2]   ;;  %s19_s11 = int_to_ptr.hbm [resolvable:$true] %s18_s11 }
   0x3   :  { %s20_s13 = sshll.u32 %s261_s12, 4  ;;  %s35_s16 = sshll.u32 %s350_s1, 4  ;;  %s21_s13 = int_to_ptr.vmem [resolvable:$true] %s20_s13  ;;  %s36_s16 = int_to_ptr.hbm [resolvable:$true] %s35_s16 }
   0x4   :  { %s262_s17 = smov 128   ;;  %s263_s18 = smov 8  }
   0x5   :  { %26 = dma.hbm_to_vmem [thread:$0]  %s19_s11, 256, %s21_s13, [#allocation3], %s262_s17, %s262_s17, %s263_s18  }
   0x6   :  { %s264_s19 = smov [#allocation5]  }
   0x7   :  { %s37_s20 = sshll.u32 %s264_s19, 4  ;;  %s38_s20 = int_to_ptr.vmem [resolvable:$true] %s37_s20 }
   0x8   :  { %43 = dma.hbm_to_vmem [thread:$0]  %s36_s16, 256, %s38_s20, [#allocation6], %s262_s17, %s262_s17, %s263_s18  }
   0x9   :  { %255 = dma.done.wait [#allocation3], 256  }
   0xa   :  { %256 = vsyncadd [#allocation3], 4294967040 }
   0xb   :  { %257 = dma.done.wait [#allocation6], 256  }
   0xc   :  { %258 = vsyncadd [#allocation6], 4294967040  ;;  %v61_v0 = vld [vmem:[#allocation2] sm:$0xff]  ;;  %v287_v1 = vld [vmem:[#allocation2 + $0x8] sm:$0xff]  ;;  %s265_s0 = smov [#allocation7]   ;;  %s154_s23 = sshll.u32 %s351_s2, 4  ;;  %s155_s23 = int_to_ptr.hbm [resolvable:$true] %s154_s23 }
   0xd   :  { %v65_v2 = vand.u32 2147483647, %v61_v0  ;;  %v66_v3 = vand.u32 2147483647, %v287_v1  ;;  %v63_v13 = vld [vmem:[#allocation5] sm:$0xff]  ;;  %v64_v14 = vld [vmem:[#allocation5 + $0x8] sm:$0xff] }
   0xe   :  { %v73_v16 = vmax.f32 %v61_v0, 0.0  ;;  %v74_v19 = vmax.f32 %v287_v1, 0.0  ;;  %v75_v20 = vmul.f32 %v63_v13, %v61_v0  ;;  %v76_v21 = vmul.f32 %v64_v14, %v287_v1  ;;  %s152_s1 = sshll.u32 %s265_s0, 4  ;;  %s153_s1 = int_to_ptr.vmem [resolvable:$true] %s152_s1 }
   0xf   :  { %v67_v4 = vsub.f32 0.0, %v65_v2  ;;  %v68_v5 = vsub.f32 0.0, %v66_v3  ;;  %vm99_vm0 = vcmp.lt.f32.partialorder %v61_v0, 0.0  ;;  %vm100_vm1 = vcmp.lt.f32.partialorder %v287_v1, 0.0 }
  0x10   :  { %vm101_vm2 = vcmp.gt.f32.partialorder %v63_v13, 0.5  ;;  %vm102_vm3 = vcmp.gt.f32.partialorder %v64_v14, 0.5  ;;  %v77_v44 = vsub.f32 %v73_v16, %v75_v20  ;;  %v78_v49 = vsub.f32 %v74_v19, %v76_v21 }
  0x11   :  { %v69_v6 = vmul.f32 1.442695, %v67_v4  ;;  %v71_v7 = vmul.f32 1.442695, %v68_v5  ;;  %vm306_vm7 = vmxor %vm99_vm0, %vm101_vm2 }
  0x12   :  { %vm318_vm10 = vmxor %vm100_vm1, %vm102_vm3 }
  0x13   :  { %171 = vpow2.f32 %v69_v6 }
  0x14   :  { %173 = vpow2.f32 %v71_v7 }
  0x19   :  { %v290_v8 = vpop.eup %171 }
  0x1a   :  { %v292_v9 = vpop.eup %173  ;;  %v79_v10 = vadd.f32 1.0, %v290_v8  ;;  %v82_v12 = vmul.f32 -0.5, %v290_v8  ;;  %v85_v23 = vand.u32 2147483647, %v290_v8  ;;  %v105_v53 = vsel %vm306_vm7, %v290_v8, 1.0 }
  0x1b   :  { %v88_v11 = vadd.f32 1.0, %v292_v9  ;;  %v91_v15 = vmul.f32 -0.5, %v292_v9  ;;  %v94_v26 = vand.u32 2147483647, %v292_v9  ;;  %v106_v56 = vsel %vm318_vm10, %v292_v9, 1.0 }
  0x1c   :  { %175 = vlog2.f32 %v79_v10  ;;  %v83_v17 = vadd.f32 1.0, %v82_v12  ;;  %vm114_vm4 = vweird.f32 %v79_v10  ;;  %v118_v30 = vand.u32 2147483647, %v79_v10 }
  0x1d   :  { %177 = vrcp.f32 %v79_v10  ;;  %v92_v25 = vadd.f32 1.0, %v91_v15  ;;  %v120_v31 = vand.u32 2147483648, %v79_v10  ;;  %vm129_vm6 = vweird.f32 %v88_v11 }
  0x1e   :  { %179 = vrcp.f32 %v88_v11  ;;  %v84_v29 = vmul.f32 %v290_v8, %v83_v17  ;;  %v135_v34 = vand.u32 2147483648, %v88_v11  ;;  %v133_v38 = vand.u32 2147483647, %v88_v11 }
  0x1f   :  { %181 = vlog2.f32 %v88_v11  ;;  %vm310_vm9 = vcmp.lt.f32.partialorder %v85_v23, 0.0004427343  ;;  %v93_v41 = vmul.f32 %v292_v9, %v92_v25  ;;  %vm322_vm11 = vcmp.lt.f32.partialorder %v94_v26, 0.0004427343 }
  0x20   :  { %v121_v47 = vor.u32 1.1754944e-38, %v120_v31  ;;  %vm119_vm13 = vcmp.eq.f32.partialorder %v118_v30, 8.507059e+37  ;;  %v136_v51 = vor.u32 1.1754944e-38, %v135_v34  ;;  %vm134_vm15 = vcmp.eq.f32.partialorder %v133_v38, 8.507059e+37 }
  0x22   :  { %v176_v18 = vpop.eup %175 }
  0x23   :  { %v178_v22 = vpop.eup %177  ;;  %v81_v35 = vmul.f32 0.6931472, %v176_v18 }
  0x24   :  { %v180_v24 = vpop.eup %179  ;;  %v110_v27 = vmul.f32 %v178_v22, %v79_v10  ;;  %vm115_vm5 = vweird.f32 %v178_v22 }
  0x25   :  { %v182_v28 = vpop.eup %181  ;;  %v125_v32 = vmul.f32 %v180_v24, %v88_v11  ;;  %vm130_vm8 = vweird.f32 %v180_v24  ;;  %vm328_vm12 = vmor %vm114_vm4, %vm115_vm5  ;;  %v87_v52 = vsel %vm310_vm9, %v84_v29, %v81_v35 }
  0x26   :  { %v111_v33 = vsub.f32 1.0, %v110_v27  ;;  %v90_v40 = vmul.f32 0.6931472, %v182_v28  ;;  %vm131_vm14 = vmor %vm129_vm6, %vm130_vm8  ;;  %v97_v60 = vadd.f32 %v87_v52, %v77_v44 }
  0x27   :  { %v126_v37 = vsub.f32 1.0, %v125_v32 }
  0x28   :  { %v112_v43 = vmul.f32 %v178_v22, %v111_v33  ;;  %v96_v55 = vsel %vm322_vm11, %v93_v41, %v90_v40 }
  0x29   :  { %v127_v48 = vmul.f32 %v180_v24, %v126_v37  ;;  %v98_v63 = vadd.f32 %v96_v55, %v78_v49 }
  0x2a   :  { %v113_v50 = vadd.f32 %v178_v22, %v112_v43 }
  0x2b   :  { %v128_v54 = vadd.f32 %v180_v24, %v127_v48 }
  0x2c   :  { %v117_v57 = vsel %vm328_vm12, %v178_v22, %v113_v50 }
  0x2d   :  { %v122_v58 = vsel %vm119_vm13, %v121_v47, %v117_v57  ;;  %v132_v59 = vsel %vm131_vm14, %v180_v24, %v128_v54 }
  0x2e   :  { %v123_v61 = vmul.f32 %v122_v58, %v105_v53  ;;  %v137_v62 = vsel %vm134_vm15, %v136_v51, %v132_v59 }
  0x2f   :  { %v138_v0 = vmul.f32 %v137_v62, %v106_v56 }
  0x30   :  { %v139_v1 = vmul.f32 %v123_v61, %v123_v61 }
  0x31   :  { %v140_v2 = vmul.f32 %v138_v0, %v138_v0 }
  0x32   :  { %v141_v3 = vmul.f32 %v139_v1, %v97_v60 }
  0x33   :  { %v142_v4 = vmul.f32 %v140_v2, %v98_v63 }
  0x35   :  { %v144_v5 = vadd.f32 %v142_v4, %v141_v3 }
  0x37   :  { %146 = vst [vmem:[#allocation7] sm:$0xff] %v144_v5 }
  0x38   :  { %157 = dma.vmem_to_hbm [thread:$0]  %s153_s1, 128, %s155_s23, [#allocation4]  }
  0x39   :  { %259 = dma.done.wait [#allocation4], 128  }
  0x3a   :  { %260 = vsyncadd [#allocation4], 4294967168 }
  0x3b   :  { %162 = vsyncpa [#allocation3], 1 }
  0x3c   :  { %163 = vsyncpa [#allocation6], 1 }
  0x3d   :  { %164 = vsyncpa [#allocation4], 1 }

</bundles_post_ra>
